<compile_context>
chip_gen: v7x
topology: tpu7x:2x2x1
jax: 0.10.0
libtpu: 0.0.40
codegen_flags: <defaults>
</compile_context>

<pallas_src>
import jax
import jax.numpy as jnp
from jax.experimental import pallas as pl
from jax.experimental.pallas import tpu as pltpu

LANES, SUBLANES = 128, 8


def rnn_kernel(u_ref, m_ref, wblk_ref, wl_ref, bl_ref, out_ref):
    n_iter, B, H2 = u_ref.shape
    wblk = wblk_ref[...]                                    # (2H, 2H) bf16, loaded once

    # Iteration 0: state is zero, so the recurrence dot is skipped entirely.
    s = jnp.where(m_ref[0] != 0.0, jnp.tanh(u_ref[0]),
                  jnp.zeros((B, H2), jnp.float32))          # packed [h1 | h2] state, f32

    # Fully unrolled wavefront recurrence (T is tiny & static): iteration i produces h1[i]
    # in lanes [0:H] and h2[i-1] in lanes [H:2H]; frozen rows/steps keep their old state.
    for i in range(1, n_iter):
        pre = jnp.dot(s.astype(jnp.bfloat16), wblk,
                      preferred_element_type=jnp.float32) + u_ref[i]
        s = jnp.where(m_ref[i] != 0.0, jnp.tanh(pre), s)

    # Head: zero-padded (2H, 128) weight reads h2 straight out of the packed state (top H
    # rows are zero) -> one unmasked full-tile store; real logits are columns [:4].
    out_ref[...] = (jnp.dot(s.astype(jnp.bfloat16), wl_ref[...],
                            preferred_element_type=jnp.float32) + bl_ref[...])


def pack_params(emb_w, params):
    """One-time parameter packing — keep this out of the per-call path."""
    wih1, whh1, b1, wih2, whh2, b2, wlin, blin = params
    H = whh1.shape[0]
    # Hoisted layer-1 input projection: gathering this table replaces x_t @ wih1 + b1.
    proj_table = emb_w.astype(jnp.float32) @ wih1 + b1                       # (VOCAB, H)
    # Block-diagonal fused recurrence weight acting on the packed [h1 | h2] state.
    w_blk = jnp.concatenate(
        [jnp.concatenate([whh1, wih2], axis=1),
         jnp.concatenate([jnp.zeros((H, H), jnp.float32), whh2], axis=1)],
        axis=0).astype(jnp.bfloat16)                                         # (2H, 2H)
    # Lane-dense head consuming the packed state directly (rows [H:2H] carry wlin).
    wl = (jnp.zeros((2 * H, LANES), jnp.float32)
          .at[H:, :4].set(wlin).astype(jnp.bfloat16))                        # (2H, 128)
    bl = jnp.zeros((1, LANES), jnp.float32).at[:, :4].set(blin)              # (1, 128)
    return proj_table, w_blk, b2.astype(jnp.float32), wl, bl


@jax.jit
def recurrent_network_forward(tokens, packed):
    """tokens: (B, T) int32 ids (0 = pad). Returns (B, 4) float32 logits."""
    proj_table, w_blk, b2, wl, bl = packed
    B, T = tokens.shape
    H = w_blk.shape[0] // 2
    Bp = ((B + SUBLANES - 1) // SUBLANES) * SUBLANES

    lengths = jnp.sum(tokens != 0, axis=1).astype(jnp.int32)                 # (B,)
    # TODO(synk): embedding-row gather is data-dependent; done with an XLA take here (a
    # Pallas version would need a manual DMA gather, not worth it at this size).
    xproj = proj_table[tokens]                                               # (B, T, H)
    xproj = jnp.transpose(xproj, (1, 0, 2))                                  # time-major (T, B, H)
    # Pad batch to the sublane width (padded rows: length 0 -> frozen zero state) and append
    # one zero time step (the wavefront epilogue iteration that finishes layer 2).
    xproj = jnp.pad(xproj, ((0, 1), (0, Bp - B), (0, 0)))                    # (T+1, Bp, H)
    lengths = jnp.pad(lengths, (0, Bp - B))                                  # (Bp,)

    # Per-iteration additive input to the packed state: [xproj[t] | b2]  (b1 already baked in).
    u = jnp.concatenate(
        [xproj, jnp.broadcast_to(b2.reshape(1, 1, H), (T + 1, Bp, H))],
        axis=-1)                                                             # (T+1, Bp, 2H)

    # Packed-sequence freeze masks, precomputed for the whole wavefront:
    #   lanes [0:H]  (layer 1, step i)    live iff i < len
    #   lanes [H:2H] (layer 2, step i-1)  live iff 1 <= i and i-1 < len
    t_idx = jnp.arange(T + 1)[:, None]                                       # (T+1, 1)
    m1 = t_idx < lengths[None, :]
    m2 = (t_idx >= 1) & ((t_idx - 1) < lengths[None, :])
    mask = jnp.concatenate(
        [jnp.broadcast_to(m1[:, :, None], (T + 1, Bp, H)),
         jnp.broadcast_to(m2[:, :, None], (T + 1, Bp, H))],
        axis=-1).astype(jnp.float32)                                         # (T+1, Bp, 2H)

    full = lambda shape: pl.BlockSpec(shape, lambda i: (0,) * len(shape))

    out = pl.pallas_call(
        rnn_kernel,
        out_shape=jax.ShapeDtypeStruct((Bp, LANES), jnp.float32),
        grid=(1,),                                   # whole problem VMEM-resident, single step
        in_specs=[
            full((T + 1, Bp, 2 * H)),                # u: time-major per-step inputs
            full((T + 1, Bp, 2 * H)),                # freeze masks
            full((2 * H, 2 * H)),                    # fused block-diagonal recurrence weight
            full((2 * H, LANES)),                    # lane-padded head weight
            full((1, LANES)),                        # lane-padded head bias
        ],
        out_specs=full((Bp, LANES)),
        compiler_params=pltpu.CompilerParams(dimension_semantics=("arbitrary",)),
        # Note: on v7x with Bp >= 16, add a leading "parallel" batch grid axis so both
        # TensorCores run independent batch shards; at Bp = 8 a single block is best.
    )(u, mask, w_blk, wl, bl)

    return out[:B, :4]


def reference_forward(tokens, emb_w, params):
    """Pure-JAX reference mirroring the PyTorch forward (f32 throughout)."""
    wih1, whh1, b1, wih2, whh2, b2, wlin, blin = params
    B, T = tokens.shape
    H = whh1.shape[0]
    lengths = jnp.sum(tokens != 0, axis=1)
    x = emb_w[tokens].astype(jnp.float32)  # (B, T, D)

    def step(carry, t):
        h1, h2 = carry
        x_t = x[:, t, :]
        h1n = jnp.tanh(x_t @ wih1 + h1 @ whh1 + b1)
        h2n = jnp.tanh(h1n @ wih2 + h2 @ whh2 + b2)
        m = (t < lengths)[:, None]
        return (jnp.where(m, h1n, h1), jnp.where(m, h2n, h2)), None

    (h1, h2), _ = jax.lax.scan(step,
                               (jnp.zeros((B, H)), jnp.zeros((B, H))),
                               jnp.arange(T))
    return h2 @ wlin + blin


if __name__ == "__main__":
    VOCAB, D, H, B, T = 12, 16, 32, 4, 8   # input_size=D, hidden_size=H

    key = jax.random.PRNGKey(0)
    k_emb, k_tok, k1, k2, k3, k4, k5, k6, k7, k8, k9, k10 = jax.random.split(key, 12)

    # deterministic parameters (shapes follow nn.Embedding / nn.RNN(D,H,2) / nn.Linear(H,4))
    emb_w = jax.random.normal(k_emb, (VOCAB, D), jnp.float32) * 0.5
    s = 1.0 / jnp.sqrt(H)
    wih1 = jax.random.uniform(k1, (D, H), jnp.float32, -s, s)    # weight_ih_l0^T
    whh1 = jax.random.uniform(k2, (H, H), jnp.float32, -s, s)    # weight_hh_l0^T
    b1 = (jax.random.uniform(k3, (1, H), jnp.float32, -s, s)
          + jax.random.uniform(k4, (1, H), jnp.float32, -s, s))  # b_ih_l0 + b_hh_l0
    wih2 = jax.random.uniform(k5, (H, H), jnp.float32, -s, s)    # weight_ih_l1^T
    whh2 = jax.random.uniform(k6, (H, H), jnp.float32, -s, s)    # weight_hh_l1^T
    b2 = (jax.random.uniform(k7, (1, H), jnp.float32, -s, s)
          + jax.random.uniform(k8, (1, H), jnp.float32, -s, s))  # b_ih_l1 + b_hh_l1
    wlin = jax.random.uniform(k9, (H, 4), jnp.float32, -s, s)    # linear.weight^T
    blin = jax.random.uniform(k10, (1, 4), jnp.float32, -s, s)   # linear.bias
    params = (wih1, whh1, b1, wih2, whh2, b2, wlin, blin)

    # token ids: nonzero tokens at the front of each row, zero-padded tail
    lengths = jnp.array([8, 5, 3, 6], dtype=jnp.int32)
    toks = jax.random.randint(k_tok, (B, T), 1, VOCAB, dtype=jnp.int32)
    valid = jnp.arange(T)[None, :] < lengths[:, None]
    tokens = jnp.where(valid, toks, 0)

    packed = pack_params(emb_w, params)            # one-time packing, off the per-call path
    out = recurrent_network_forward(tokens, packed)
    out = jax.block_until_ready(out)

    ref = reference_forward(tokens, emb_w, params)
    assert out.shape == (B, 4)
    # Tolerance slightly relaxed vs. pure-f32: matmul operands run in bf16 (f32 accumulate).
    assert jnp.allclose(out, ref, atol=2e-2, rtol=2e-2), (out, ref)

    print("KERNEL_OK")
</pallas_src>

<mosaic_0001>
module attributes {stable_mosaic.version = 11 : i64} {
  func.func @rnn_kernel(%arg0: i32, %arg1: memref<9x8x64xf32, #tpu.memory_space<vmem>>, %arg2: memref<9x8x64xf32, #tpu.memory_space<vmem>>, %arg3: memref<64x64xbf16, #tpu.memory_space<vmem>>, %arg4: memref<64x128xbf16, #tpu.memory_space<vmem>>, %arg5: memref<1x128xf32, #tpu.memory_space<vmem>>, %arg6: memref<8x128xf32, #tpu.memory_space<vmem>>) attributes {dimension_semantics = [#tpu.dimension_semantics<arbitrary>], iteration_bounds = array<i64: 1>, scalar_prefetch = 0 : i64, scratch_operands = 0 : i64, tpu.core_type = #tpu.core_type<tc>, window_params = [{pipeline_mode = #tpu.pipeline_mode<synchronous>, transform_indices = @transform_0, window_bounds = array<i64: 9, 8, 64>}, {pipeline_mode = #tpu.pipeline_mode<synchronous>, transform_indices = @transform_1, window_bounds = array<i64: 9, 8, 64>}, {pipeline_mode = #tpu.pipeline_mode<synchronous>, transform_indices = @transform_2, window_bounds = array<i64: 64, 64>}, {pipeline_mode = #tpu.pipeline_mode<synchronous>, transform_indices = @transform_3, window_bounds = array<i64: 64, 128>}, {pipeline_mode = #tpu.pipeline_mode<synchronous>, transform_indices = @transform_4, window_bounds = array<i64: 1, 128>}, {pipeline_mode = #tpu.pipeline_mode<synchronous>, transform_indices = @transform_5, window_bounds = array<i64: 8, 128>}]} {
    %c0 = arith.constant 0 : index
    %c0_0 = arith.constant 0 : index
    %0 = vector.load %arg3[%c0, %c0_0] : memref<64x64xbf16, #tpu.memory_space<vmem>>, vector<64x64xbf16>
    %c0_1 = arith.constant 0 : index
    %c0_2 = arith.constant 0 : index
    %c0_3 = arith.constant 0 : index
    %1 = vector.load %arg2[%c0_1, %c0_2, %c0_3] : memref<9x8x64xf32, #tpu.memory_space<vmem>>, vector<1x8x64xf32>
    %2 = vector.shape_cast %1 : vector<1x8x64xf32> to vector<8x64xf32>
    %cst = arith.constant 0.000000e+00 : f32
    %3 = vector.broadcast %cst : f32 to vector<8x64xf32>
    %4 = arith.cmpf one, %2, %3 : vector<8x64xf32>
    %c0_4 = arith.constant 0 : index
    %c0_5 = arith.constant 0 : index
    %c0_6 = arith.constant 0 : index
    %5 = vector.load %arg1[%c0_4, %c0_5, %c0_6] : memref<9x8x64xf32, #tpu.memory_space<vmem>>, vector<1x8x64xf32>
    %6 = vector.shape_cast %5 : vector<1x8x64xf32> to vector<8x64xf32>
    %7 = math.tanh %6 : vector<8x64xf32>
    %cst_7 = arith.constant 0.000000e+00 : f32
    %8 = vector.broadcast %cst_7 : f32 to vector<8x64xf32>
    %9 = arith.select %4, %7, %8 : vector<8x64xi1>, vector<8x64xf32>
    %10 = arith.truncf %9 : vector<8x64xf32> to vector<8x64xbf16>
    %cst_8 = arith.constant dense<0.000000e+00> : vector<8x64xf32>
    %11 = tpu.matmul %10, %0, %cst_8 {dimension_numbers = #tpu.dot_dimension_numbers<[1], [0], [0], [1], [0, 0, 1, 1], [], []>} : vector<8x64xbf16>, vector<64x64xbf16>, vector<8x64xf32> -> vector<8x64xf32>
    %c1 = arith.constant 1 : index
    %c0_9 = arith.constant 0 : index
    %c0_10 = arith.constant 0 : index
    %12 = vector.load %arg1[%c1, %c0_9, %c0_10] : memref<9x8x64xf32, #tpu.memory_space<vmem>>, vector<1x8x64xf32>
    %13 = vector.shape_cast %12 : vector<1x8x64xf32> to vector<8x64xf32>
    %14 = arith.addf %11, %13 : vector<8x64xf32>
    %c1_11 = arith.constant 1 : index
    %c0_12 = arith.constant 0 : index
    %c0_13 = arith.constant 0 : index
    %15 = vector.load %arg2[%c1_11, %c0_12, %c0_13] : memref<9x8x64xf32, #tpu.memory_space<vmem>>, vector<1x8x64xf32>
    %16 = vector.shape_cast %15 : vector<1x8x64xf32> to vector<8x64xf32>
    %cst_14 = arith.constant 0.000000e+00 : f32
    %17 = vector.broadcast %cst_14 : f32 to vector<8x64xf32>
    %18 = arith.cmpf one, %16, %17 : vector<8x64xf32>
    %19 = math.tanh %14 : vector<8x64xf32>
    %20 = arith.select %18, %19, %9 : vector<8x64xi1>, vector<8x64xf32>
    %21 = arith.truncf %20 : vector<8x64xf32> to vector<8x64xbf16>
    %cst_15 = arith.constant dense<0.000000e+00> : vector<8x64xf32>
    %22 = tpu.matmul %21, %0, %cst_15 {dimension_numbers = #tpu.dot_dimension_numbers<[1], [0], [0], [1], [0, 0, 1, 1], [], []>} : vector<8x64xbf16>, vector<64x64xbf16>, vector<8x64xf32> -> vector<8x64xf32>
    %c2 = arith.constant 2 : index
    %c0_16 = arith.constant 0 : index
    %c0_17 = arith.constant 0 : index
    %23 = vector.load %arg1[%c2, %c0_16, %c0_17] : memref<9x8x64xf32, #tpu.memory_space<vmem>>, vector<1x8x64xf32>
    %24 = vector.shape_cast %23 : vector<1x8x64xf32> to vector<8x64xf32>
    %25 = arith.addf %22, %24 : vector<8x64xf32>
    %c2_18 = arith.constant 2 : index
    %c0_19 = arith.constant 0 : index
    %c0_20 = arith.constant 0 : index
    %26 = vector.load %arg2[%c2_18, %c0_19, %c0_20] : memref<9x8x64xf32, #tpu.memory_space<vmem>>, vector<1x8x64xf32>
    %27 = vector.shape_cast %26 : vector<1x8x64xf32> to vector<8x64xf32>
    %cst_21 = arith.constant 0.000000e+00 : f32
    %28 = vector.broadcast %cst_21 : f32 to vector<8x64xf32>
    %29 = arith.cmpf one, %27, %28 : vector<8x64xf32>
    %30 = math.tanh %25 : vector<8x64xf32>
    %31 = arith.select %29, %30, %20 : vector<8x64xi1>, vector<8x64xf32>
    %32 = arith.truncf %31 : vector<8x64xf32> to vector<8x64xbf16>
    %cst_22 = arith.constant dense<0.000000e+00> : vector<8x64xf32>
    %33 = tpu.matmul %32, %0, %cst_22 {dimension_numbers = #tpu.dot_dimension_numbers<[1], [0], [0], [1], [0, 0, 1, 1], [], []>} : vector<8x64xbf16>, vector<64x64xbf16>, vector<8x64xf32> -> vector<8x64xf32>
    %c3 = arith.constant 3 : index
    %c0_23 = arith.constant 0 : index
    %c0_24 = arith.constant 0 : index
    %34 = vector.load %arg1[%c3, %c0_23, %c0_24] : memref<9x8x64xf32, #tpu.memory_space<vmem>>, vector<1x8x64xf32>
    %35 = vector.shape_cast %34 : vector<1x8x64xf32> to vector<8x64xf32>
    %36 = arith.addf %33, %35 : vector<8x64xf32>
    %c3_25 = arith.constant 3 : index
    %c0_26 = arith.constant 0 : index
    %c0_27 = arith.constant 0 : index
    %37 = vector.load %arg2[%c3_25, %c0_26, %c0_27] : memref<9x8x64xf32, #tpu.memory_space<vmem>>, vector<1x8x64xf32>
    %38 = vector.shape_cast %37 : vector<1x8x64xf32> to vector<8x64xf32>
    %cst_28 = arith.constant 0.000000e+00 : f32
    %39 = vector.broadcast %cst_28 : f32 to vector<8x64xf32>
    %40 = arith.cmpf one, %38, %39 : vector<8x64xf32>
    %41 = math.tanh %36 : vector<8x64xf32>
    %42 = arith.select %40, %41, %31 : vector<8x64xi1>, vector<8x64xf32>
    %43 = arith.truncf %42 : vector<8x64xf32> to vector<8x64xbf16>
    %cst_29 = arith.constant dense<0.000000e+00> : vector<8x64xf32>
    %44 = tpu.matmul %43, %0, %cst_29 {dimension_numbers = #tpu.dot_dimension_numbers<[1], [0], [0], [1], [0, 0, 1, 1], [], []>} : vector<8x64xbf16>, vector<64x64xbf16>, vector<8x64xf32> -> vector<8x64xf32>
    %c4 = arith.constant 4 : index
    %c0_30 = arith.constant 0 : index
    %c0_31 = arith.constant 0 : index
    %45 = vector.load %arg1[%c4, %c0_30, %c0_31] : memref<9x8x64xf32, #tpu.memory_space<vmem>>, vector<1x8x64xf32>
    %46 = vector.shape_cast %45 : vector<1x8x64xf32> to vector<8x64xf32>
    %47 = arith.addf %44, %46 : vector<8x64xf32>
    %c4_32 = arith.constant 4 : index
    %c0_33 = arith.constant 0 : index
    %c0_34 = arith.constant 0 : index
    %48 = vector.load %arg2[%c4_32, %c0_33, %c0_34] : memref<9x8x64xf32, #tpu.memory_space<vmem>>, vector<1x8x64xf32>
    %49 = vector.shape_cast %48 : vector<1x8x64xf32> to vector<8x64xf32>
    %cst_35 = arith.constant 0.000000e+00 : f32
    %50 = vector.broadcast %cst_35 : f32 to vector<8x64xf32>
    %51 = arith.cmpf one, %49, %50 : vector<8x64xf32>
    %52 = math.tanh %47 : vector<8x64xf32>
    %53 = arith.select %51, %52, %42 : vector<8x64xi1>, vector<8x64xf32>
    %54 = arith.truncf %53 : vector<8x64xf32> to vector<8x64xbf16>
    %cst_36 = arith.constant dense<0.000000e+00> : vector<8x64xf32>
    %55 = tpu.matmul %54, %0, %cst_36 {dimension_numbers = #tpu.dot_dimension_numbers<[1], [0], [0], [1], [0, 0, 1, 1], [], []>} : vector<8x64xbf16>, vector<64x64xbf16>, vector<8x64xf32> -> vector<8x64xf32>
    %c5 = arith.constant 5 : index
    %c0_37 = arith.constant 0 : index
    %c0_38 = arith.constant 0 : index
    %56 = vector.load %arg1[%c5, %c0_37, %c0_38] : memref<9x8x64xf32, #tpu.memory_space<vmem>>, vector<1x8x64xf32>
    %57 = vector.shape_cast %56 : vector<1x8x64xf32> to vector<8x64xf32>
    %58 = arith.addf %55, %57 : vector<8x64xf32>
    %c5_39 = arith.constant 5 : index
    %c0_40 = arith.constant 0 : index
    %c0_41 = arith.constant 0 : index
    %59 = vector.load %arg2[%c5_39, %c0_40, %c0_41] : memref<9x8x64xf32, #tpu.memory_space<vmem>>, vector<1x8x64xf32>
    %60 = vector.shape_cast %59 : vector<1x8x64xf32> to vector<8x64xf32>
    %cst_42 = arith.constant 0.000000e+00 : f32
    %61 = vector.broadcast %cst_42 : f32 to vector<8x64xf32>
    %62 = arith.cmpf one, %60, %61 : vector<8x64xf32>
    %63 = math.tanh %58 : vector<8x64xf32>
    %64 = arith.select %62, %63, %53 : vector<8x64xi1>, vector<8x64xf32>
    %65 = arith.truncf %64 : vector<8x64xf32> to vector<8x64xbf16>
    %cst_43 = arith.constant dense<0.000000e+00> : vector<8x64xf32>
    %66 = tpu.matmul %65, %0, %cst_43 {dimension_numbers = #tpu.dot_dimension_numbers<[1], [0], [0], [1], [0, 0, 1, 1], [], []>} : vector<8x64xbf16>, vector<64x64xbf16>, vector<8x64xf32> -> vector<8x64xf32>
    %c6 = arith.constant 6 : index
    %c0_44 = arith.constant 0 : index
    %c0_45 = arith.constant 0 : index
    %67 = vector.load %arg1[%c6, %c0_44, %c0_45] : memref<9x8x64xf32, #tpu.memory_space<vmem>>, vector<1x8x64xf32>
    %68 = vector.shape_cast %67 : vector<1x8x64xf32> to vector<8x64xf32>
    %69 = arith.addf %66, %68 : vector<8x64xf32>
    %c6_46 = arith.constant 6 : index
    %c0_47 = arith.constant 0 : index
    %c0_48 = arith.constant 0 : index
    %70 = vector.load %arg2[%c6_46, %c0_47, %c0_48] : memref<9x8x64xf32, #tpu.memory_space<vmem>>, vector<1x8x64xf32>
    %71 = vector.shape_cast %70 : vector<1x8x64xf32> to vector<8x64xf32>
    %cst_49 = arith.constant 0.000000e+00 : f32
    %72 = vector.broadcast %cst_49 : f32 to vector<8x64xf32>
    %73 = arith.cmpf one, %71, %72 : vector<8x64xf32>
    %74 = math.tanh %69 : vector<8x64xf32>
    %75 = arith.select %73, %74, %64 : vector<8x64xi1>, vector<8x64xf32>
    %76 = arith.truncf %75 : vector<8x64xf32> to vector<8x64xbf16>
    %cst_50 = arith.constant dense<0.000000e+00> : vector<8x64xf32>
    %77 = tpu.matmul %76, %0, %cst_50 {dimension_numbers = #tpu.dot_dimension_numbers<[1], [0], [0], [1], [0, 0, 1, 1], [], []>} : vector<8x64xbf16>, vector<64x64xbf16>, vector<8x64xf32> -> vector<8x64xf32>
    %c7 = arith.constant 7 : index
    %c0_51 = arith.constant 0 : index
    %c0_52 = arith.constant 0 : index
    %78 = vector.load %arg1[%c7, %c0_51, %c0_52] : memref<9x8x64xf32, #tpu.memory_space<vmem>>, vector<1x8x64xf32>
    %79 = vector.shape_cast %78 : vector<1x8x64xf32> to vector<8x64xf32>
    %80 = arith.addf %77, %79 : vector<8x64xf32>
    %c7_53 = arith.constant 7 : index
    %c0_54 = arith.constant 0 : index
    %c0_55 = arith.constant 0 : index
    %81 = vector.load %arg2[%c7_53, %c0_54, %c0_55] : memref<9x8x64xf32, #tpu.memory_space<vmem>>, vector<1x8x64xf32>
    %82 = vector.shape_cast %81 : vector<1x8x64xf32> to vector<8x64xf32>
    %cst_56 = arith.constant 0.000000e+00 : f32
    %83 = vector.broadcast %cst_56 : f32 to vector<8x64xf32>
    %84 = arith.cmpf one, %82, %83 : vector<8x64xf32>
    %85 = math.tanh %80 : vector<8x64xf32>
    %86 = arith.select %84, %85, %75 : vector<8x64xi1>, vector<8x64xf32>
    %87 = arith.truncf %86 : vector<8x64xf32> to vector<8x64xbf16>
    %cst_57 = arith.constant dense<0.000000e+00> : vector<8x64xf32>
    %88 = tpu.matmul %87, %0, %cst_57 {dimension_numbers = #tpu.dot_dimension_numbers<[1], [0], [0], [1], [0, 0, 1, 1], [], []>} : vector<8x64xbf16>, vector<64x64xbf16>, vector<8x64xf32> -> vector<8x64xf32>
    %c8 = arith.constant 8 : index
    %c0_58 = arith.constant 0 : index
    %c0_59 = arith.constant 0 : index
    %89 = vector.load %arg1[%c8, %c0_58, %c0_59] : memref<9x8x64xf32, #tpu.memory_space<vmem>>, vector<1x8x64xf32>
    %90 = vector.shape_cast %89 : vector<1x8x64xf32> to vector<8x64xf32>
    %91 = arith.addf %88, %90 : vector<8x64xf32>
    %c8_60 = arith.constant 8 : index
    %c0_61 = arith.constant 0 : index
    %c0_62 = arith.constant 0 : index
    %92 = vector.load %arg2[%c8_60, %c0_61, %c0_62] : memref<9x8x64xf32, #tpu.memory_space<vmem>>, vector<1x8x64xf32>
    %93 = vector.shape_cast %92 : vector<1x8x64xf32> to vector<8x64xf32>
    %cst_63 = arith.constant 0.000000e+00 : f32
    %94 = vector.broadcast %cst_63 : f32 to vector<8x64xf32>
    %95 = arith.cmpf one, %93, %94 : vector<8x64xf32>
    %96 = math.tanh %91 : vector<8x64xf32>
    %97 = arith.select %95, %96, %86 : vector<8x64xi1>, vector<8x64xf32>
    %98 = arith.truncf %97 : vector<8x64xf32> to vector<8x64xbf16>
    %c0_64 = arith.constant 0 : index
    %c0_65 = arith.constant 0 : index
    %99 = vector.load %arg4[%c0_64, %c0_65] : memref<64x128xbf16, #tpu.memory_space<vmem>>, vector<64x128xbf16>
    %cst_66 = arith.constant dense<0.000000e+00> : vector<8x128xf32>
    %100 = tpu.matmul %98, %99, %cst_66 {dimension_numbers = #tpu.dot_dimension_numbers<[1], [0], [0], [1], [0, 0, 1, 1], [], []>} : vector<8x64xbf16>, vector<64x128xbf16>, vector<8x128xf32> -> vector<8x128xf32>
    %c0_67 = arith.constant 0 : index
    %c0_68 = arith.constant 0 : index
    %101 = vector.load %arg5[%c0_67, %c0_68] : memref<1x128xf32, #tpu.memory_space<vmem>>, vector<1x128xf32>
    %102 = vector.broadcast %101 : vector<1x128xf32> to vector<8x128xf32>
    %103 = arith.addf %100, %102 : vector<8x128xf32>
    %c0_69 = arith.constant 0 : index
    %c0_70 = arith.constant 0 : index
    %104 = vector.load %arg6[%c0_69, %c0_70] : memref<8x128xf32, #tpu.memory_space<vmem>>, vector<8x128xf32>
    tpu.vector_store %arg6[%c0_69, %c0_70], %103 {strides = array<i32>} : memref<8x128xf32, #tpu.memory_space<vmem>>, vector<8x128xf32>,
    return
  }
  func.func @transform_0(%arg0: i32) -> (i32, i32, i32) {
    %c0_i32 = arith.constant 0 : i32
    %c0_i32_0 = arith.constant 0 : i32
    %c0_i32_1 = arith.constant 0 : i32
    %c0_i32_2 = arith.constant 0 : i32
    return %c0_i32, %c0_i32_0, %c0_i32_1 : i32, i32, i32
  }
  func.func @transform_1(%arg0: i32) -> (i32, i32, i32) {
    %c0_i32 = arith.constant 0 : i32
    %c0_i32_0 = arith.constant 0 : i32
    %c0_i32_1 = arith.constant 0 : i32
    %c0_i32_2 = arith.constant 0 : i32
    return %c0_i32, %c0_i32_0, %c0_i32_1 : i32, i32, i32
  }
  func.func @transform_2(%arg0: i32) -> (i32, i32) {
    %c0_i32 = arith.constant 0 : i32
    %c0_i32_0 = arith.constant 0 : i32
    %c0_i32_1 = arith.constant 0 : i32
    return %c0_i32, %c0_i32_0 : i32, i32
  }
  func.func @transform_3(%arg0: i32) -> (i32, i32) {
    %c0_i32 = arith.constant 0 : i32
    %c0_i32_0 = arith.constant 0 : i32
    %c0_i32_1 = arith.constant 0 : i32
    return %c0_i32, %c0_i32_0 : i32, i32
  }
  func.func @transform_4(%arg0: i32) -> (i32, i32) {
    %c0_i32 = arith.constant 0 : i32
    %c0_i32_0 = arith.constant 0 : i32
    %c0_i32_1 = arith.constant 0 : i32
    return %c0_i32, %c0_i32_0 : i32, i32
  }
  func.func @transform_5(%arg0: i32) -> (i32, i32) {
    %c0_i32 = arith.constant 0 : i32
    %c0_i32_0 = arith.constant 0 : i32
    %c0_i32_1 = arith.constant 0 : i32
    return %c0_i32, %c0_i32_0 : i32, i32
  }
}

</mosaic_0001>

<bundles_post_ra>
// kernel: recurrent_network_forward.1
= control target key start
LH: loop header
LB: loop body
LE: loop exit
PB: predicated region body
PF: predicated region fallthrough
CT: control target
= control target key end

     0   :  { %v770_v0 = vmov 0.0   ;;  %vm771_vm0 = vmmov 0   ;;  %vm61_vm2 = vcmask 523264   ;;  %s989_s2 = inlined_call_operand.vmem [shape: bf16[64,64], index: 2, kind: input, shape index: {}]   ;;  %s990_s0 = inlined_call_operand.vmem [shape: f32[9,8,64], index: 0, kind: input, shape index: {}]   ;;  %s991_s1 = inlined_call_operand.vmem [shape: f32[9,8,64], index: 1, kind: input, shape index: {}]   ;;  %s992_s3 = inlined_call_operand.vmem [shape: bf16[64,128], index: 3, kind: input, shape index: {}]   ;;  %s993_s4 = inlined_call_operand.vmem [shape: f32[1,128], index: 4, kind: input, shape index: {}]   ;;  %s994_s5 = inlined_call_operand.vmem [shape: f32[8,128], index: 5, kind: output, shape index: {}]  }
   0x1   :  { %634 = vmatprep.subr.bf16.mxu0 %v770_v0  ;;  %v806_v1 = vld [vmem:[%s989_s2] sm:$0xff]   ;;  %642 = vmatprep.mubr.msk.bf16.mxu0 %vm771_vm0, %v770_v0  ;;  %v817_v2 = vld [vmem:[%s989_s2 + $0x8] sm:$0xff]   ;;  %v829_v4 = vld [vmem:[%s989_s2 + $0x10] sm:$0xff]  }
   0x2   :  { %646 = vmatprep.subr.bf16.mxu1 %v770_v0  ;;  %654 = vmatprep.mubr.msk.bf16.mxu1 %vm771_vm0, %v770_v0  ;;  %v31_v3 = vld [vmem:[%s990_s0] sm:$0xff]  ;;  %v838_v5 = vld [vmem:[%s989_s2 + $0x18] sm:$0xff]   ;;  %v555_v10 = vld [vmem:[%s990_s0 + $0x8] sm:$0xff] }
   0x3   :  { %635 = vmatpush3.bf16.msra.mxu0 %v806_v1  ;;  %647 = vmatpush3.bf16.msra.mxu1 %v806_v1  ;;  %752 = vtanh.f32 %v31_v3  ;;  %v29_v6 = vld [vmem:[%s991_s1] sm:$0xff]  ;;  %v561_v16 = vld [vmem:[%s991_s1 + $0x8] sm:$0xff]  ;;  %v562_v20 = vld [vmem:[%s990_s0 + $0x10] sm:$0xff] }
   0x4   :  { %636 = vmatprep.subr.bf16.mxu0 %v770_v0  ;;  %648 = vmatprep.subr.bf16.mxu1 %v770_v0  ;;  %vm30_vm1 = vcmp.ne.f32.partialorder %v29_v6, 0.0  ;;  %vm107_vm3 = vcmp.ne.f32.partialorder %v561_v16, 0.0  ;;  %v564_v26 = vld [vmem:[%s991_s1 + $0x10] sm:$0xff]  ;;  %v565_v30 = vld [vmem:[%s990_s0 + $0x18] sm:$0xff]  ;;  %v568_v40 = vld [vmem:[%s990_s0 + $0x20] sm:$0xff] }
   0x5   :  { %vm158_vm4 = vcmp.ne.f32.partialorder %v564_v26, 0.0  ;;  %v567_v36 = vld [vmem:[%s991_s1 + $0x18] sm:$0xff]  ;;  %v570_v46 = vld [vmem:[%s991_s1 + $0x20] sm:$0xff]  ;;  %v571_v50 = vld [vmem:[%s990_s0 + $0x28] sm:$0xff] }
   0x6   :  { %vm209_vm5 = vcmp.ne.f32.partialorder %v567_v36, 0.0  ;;  %vm260_vm6 = vcmp.ne.f32.partialorder %v570_v46, 0.0  ;;  %v573_v56 = vld [vmem:[%s991_s1 + $0x28] sm:$0xff]  ;;  %v574_v60 = vld [vmem:[%s990_s0 + $0x30] sm:$0xff] }
   0x7   :  { %637 = vmatpush3.bf16.msra.mxu0 %v817_v2  ;;  %649 = vmatpush3.bf16.msra.mxu1 %v817_v2  ;;  %vm311_vm7 = vcmp.ne.f32.partialorder %v573_v56, 0.0 }
   0x8   :  { %638 = vmatprep.subr.bf16.mxu0 %v770_v0  ;;  %650 = vmatprep.subr.bf16.mxu1 %v770_v0 }
   0xb   :  { %639 = vmatpush3.bf16.msra.mxu0 %v829_v4  ;;  %651 = vmatpush3.bf16.msra.mxu1 %v829_v4 }
   0xc   :  { %640 = vmatprep.subr.bf16.mxu0 %v770_v0  ;;  %652 = vmatprep.subr.bf16.mxu1 %v770_v0 }
   0xd   :  { %v753_v7 = vpop.eup %752 }
   0xe   :  { %v33_v8 = vsel %vm30_vm1, %v753_v7, 0.0 }
   0xf   :  { %641 = vmatpush3.bf16.msra.mxu0 %v838_v5  ;;  %653 = vmatpush3.bf16.msra.mxu1 %v838_v5  ;;  %v34_v9 = vpack.c.bf16 %v33_v8, %v33_v8 }
  0x10   :  { %658 = vmatprep.subr.bf16.mxu0 %v770_v0  ;;  %670 = vmatprep.subr.bf16.mxu1 %v770_v0 }
  0x12   :  { %643 = vmatmul.mubr.msk.bf16.vlgmr.msra.gmra.mrb[0].mxu0 %vm61_vm2, %v34_v9 }
  0x13   :  { %659 = vmatpush3.bf16.msra.mxu0 %v806_v1  ;;  %666 = vmatprep.mubr.msk.bf16.mxu0 %vm771_vm0, %v770_v0 }
  0x14   :  { %660 = vmatprep.subr.bf16.mxu0 %v770_v0 }
  0x17   :  { %661 = vmatpush3.bf16.msra.mxu0 %v817_v2 }
  0x18   :  { %662 = vmatprep.subr.bf16.mxu0 %v770_v0 }
  0x1b   :  { %663 = vmatpush3.bf16.msra.mxu0 %v829_v4 }
  0x1c   :  { %664 = vmatprep.subr.bf16.mxu0 %v770_v0 }
  0x1f   :  { %665 = vmatpush3.bf16.msra.mxu0 %v838_v5 }
  0x20   :  { %682 = vmatprep.subr.bf16.mxu0 %v770_v0 }
  0xe5   :  { %v99_v11 = vpop.f32.mrb[0].mxu0 }
  0xe6   :  { %v100_v12 = vadd.f32 %v555_v10, %v99_v11  ;;  %v644_v13 = vpop.f32.mrb[1].mxu0 }
  0xe7   :  { %v102_v14 = vpop.f32.mrb[2].mxu0  ;;  %v579_v13 = vld [vmem:[%s991_s1 + $0x38] sm:$0xff] }
  0xe8   :  { %754 = vtanh.f32 %v100_v12  ;;  %v645_v15 = vpop.f32.mrb[3].mxu0  ;;  %vm413_vm9 = vcmp.ne.f32.partialorder %v579_v13, 0.0 }
  0xf2   :  { %v755_v17 = vpop.eup %754 }
  0xf3   :  { %v109_v18 = vsel %vm107_vm3, %v755_v17, %v33_v8  ;;  %v748_v17 = vld [vmem:[%s992_s3] sm:$0xff]  }
  0xf4   :  { %v110_v19 = vpack.c.bf16 %v109_v18, %v109_v18 }
  0xf6   :  { %655 = vmatmul.mubr.msk.bf16.vlgmr.msra.gmra.mrb[0].mxu1 %vm61_vm2, %v110_v19  ;;  %v750_v19 = vld [vmem:[%s992_s3 + $0x10] sm:$0xff]  }
  0xf7   :  { %671 = vmatpush3.bf16.msra.mxu1 %v806_v1  ;;  %678 = vmatprep.mubr.msk.bf16.mxu1 %vm771_vm0, %v770_v0 }
  0xf8   :  { %672 = vmatprep.subr.bf16.mxu1 %v770_v0 }
  0xfb   :  { %673 = vmatpush3.bf16.msra.mxu1 %v817_v2 }
  0xfc   :  { %674 = vmatprep.subr.bf16.mxu1 %v770_v0 }
  0xff   :  { %675 = vmatpush3.bf16.msra.mxu1 %v829_v4 }
 0x100   :  { %676 = vmatprep.subr.bf16.mxu1 %v770_v0 }
 0x103   :  { %677 = vmatpush3.bf16.msra.mxu1 %v838_v5 }
 0x104   :  { %694 = vmatprep.subr.bf16.mxu1 %v770_v0 }
 0x1c9   :  { %v150_v21 = vpop.f32.mrb[0].mxu1 }
 0x1ca   :  { %v151_v22 = vadd.f32 %v562_v20, %v150_v21  ;;  %v656_v23 = vpop.f32.mrb[1].mxu1  ;;  %v751_v20 = vld [vmem:[%s992_s3 + $0x18] sm:$0xff]   ;;  %v580_v21 = vld [vmem:[%s990_s0 + $0x40] sm:$0xff] }
 0x1cb   :  { %v153_v24 = vpop.f32.mrb[2].mxu1 }
 0x1cc   :  { %756 = vtanh.f32 %v151_v22  ;;  %v657_v25 = vpop.f32.mrb[3].mxu1 }
 0x1d6   :  { %v757_v27 = vpop.eup %756 }
 0x1d7   :  { %v160_v28 = vsel %vm158_vm4, %v757_v27, %v109_v18  ;;  %v749_v18 = vld [vmem:[%s992_s3 + $0x8] sm:$0xff]   ;;  %v582_v27 = vld [vmem:[%s991_s1 + $0x40] sm:$0xff] }
 0x1d8   :  { %v161_v29 = vpack.c.bf16 %v160_v28, %v160_v28  ;;  %vm464_vm10 = vcmp.ne.f32.partialorder %v582_v27, 0.0 }
 0x1da   :  { %667 = vmatmul.mubr.msk.bf16.vlgmr.msra.gmra.mrb[4].mxu0 %vm61_vm2, %v161_v29 }
 0x1db   :  { %683 = vmatpush3.bf16.msra.mxu0 %v806_v1  ;;  %690 = vmatprep.mubr.msk.bf16.mxu0 %vm771_vm0, %v770_v0 }
 0x1dc   :  { %684 = vmatprep.subr.bf16.mxu0 %v770_v0 }
 0x1df   :  { %685 = vmatpush3.bf16.msra.mxu0 %v817_v2 }
 0x1e0   :  { %686 = vmatprep.subr.bf16.mxu0 %v770_v0 }
 0x1e3   :  { %687 = vmatpush3.bf16.msra.mxu0 %v829_v4 }
 0x1e4   :  { %688 = vmatprep.subr.bf16.mxu0 %v770_v0 }
 0x1e7   :  { %689 = vmatpush3.bf16.msra.mxu0 %v838_v5 }
 0x1e8   :  { %706 = vmatprep.subr.bf16.mxu0 %v770_v0 }
 0x2ad   :  { %v201_v31 = vpop.f32.mrb[4].mxu0 }
 0x2ae   :  { %v202_v32 = vadd.f32 %v565_v30, %v201_v31  ;;  %v668_v33 = vpop.f32.mrb[5].mxu0 }
 0x2af   :  { %v204_v34 = vpop.f32.mrb[6].mxu0 }
 0x2b0   :  { %758 = vtanh.f32 %v202_v32  ;;  %v669_v35 = vpop.f32.mrb[7].mxu0 }
 0x2ba   :  { %v759_v37 = vpop.eup %758 }
 0x2bb   :  { %v211_v38 = vsel %vm209_vm5, %v759_v37, %v160_v28 }
 0x2bc   :  { %v212_v39 = vpack.c.bf16 %v211_v38, %v211_v38 }
 0x2be   :  { %679 = vmatmul.mubr.msk.bf16.vlgmr.msra.gmra.mrb[4].mxu1 %vm61_vm2, %v212_v39 }
 0x2bf   :  { %695 = vmatpush3.bf16.msra.mxu1 %v806_v1  ;;  %702 = vmatprep.mubr.msk.bf16.mxu1 %vm771_vm0, %v770_v0 }
 0x2c0   :  { %696 = vmatprep.subr.bf16.mxu1 %v770_v0 }
 0x2c3   :  { %697 = vmatpush3.bf16.msra.mxu1 %v817_v2 }
 0x2c4   :  { %698 = vmatprep.subr.bf16.mxu1 %v770_v0 }
 0x2c7   :  { %699 = vmatpush3.bf16.msra.mxu1 %v829_v4 }
 0x2c8   :  { %700 = vmatprep.subr.bf16.mxu1 %v770_v0 }
 0x2cb   :  { %701 = vmatpush3.bf16.msra.mxu1 %v838_v5 }
 0x2cc   :  { %718 = vmatprep.subr.bf16.mxu1 %v770_v0 }
 0x391   :  { %v252_v41 = vpop.f32.mrb[4].mxu1 }
 0x392   :  { %v253_v42 = vadd.f32 %v568_v40, %v252_v41  ;;  %v680_v43 = vpop.f32.mrb[5].mxu1 }
 0x393   :  { %v255_v44 = vpop.f32.mrb[6].mxu1 }
 0x394   :  { %760 = vtanh.f32 %v253_v42  ;;  %v681_v45 = vpop.f32.mrb[7].mxu1 }
 0x39e   :  { %v761_v47 = vpop.eup %760 }
 0x39f   :  { %v262_v48 = vsel %vm260_vm6, %v761_v47, %v211_v38 }
 0x3a0   :  { %v263_v49 = vpack.c.bf16 %v262_v48, %v262_v48 }
 0x3a2   :  { %691 = vmatmul.mubr.msk.bf16.vlgmr.msra.gmra.mrb[8].mxu0 %vm61_vm2, %v263_v49 }
 0x3a3   :  { %707 = vmatpush3.bf16.msra.mxu0 %v806_v1  ;;  %714 = vmatprep.mubr.msk.bf16.mxu0 %vm771_vm0, %v770_v0 }
 0x3a4   :  { %708 = vmatprep.subr.bf16.mxu0 %v770_v0 }
 0x3a7   :  { %709 = vmatpush3.bf16.msra.mxu0 %v817_v2 }
 0x3a8   :  { %710 = vmatprep.subr.bf16.mxu0 %v770_v0 }
 0x3ab   :  { %711 = vmatpush3.bf16.msra.mxu0 %v829_v4 }
 0x3ac   :  { %712 = vmatprep.subr.bf16.mxu0 %v770_v0 }
 0x3af   :  { %713 = vmatpush3.bf16.msra.mxu0 %v838_v5 }
 0x3b0   :  { %730 = vmatprep.subr.bf16.mxu0 %v770_v0 }
 0x475   :  { %v303_v51 = vpop.f32.mrb[8].mxu0 }
 0x476   :  { %v304_v52 = vadd.f32 %v571_v50, %v303_v51  ;;  %v692_v53 = vpop.f32.mrb[9].mxu0 }
 0x477   :  { %v306_v54 = vpop.f32.mrb[10].mxu0 }
 0x478   :  { %762 = vtanh.f32 %v304_v52  ;;  %v693_v55 = vpop.f32.mrb[11].mxu0 }
 0x482   :  { %v763_v57 = vpop.eup %762 }
 0x483   :  { %v313_v58 = vsel %vm311_vm7, %v763_v57, %v262_v48 }
 0x484   :  { %v314_v59 = vpack.c.bf16 %v313_v58, %v313_v58 }
 0x486   :  { %703 = vmatmul.mubr.msk.bf16.vlgmr.msra.gmra.mrb[8].mxu1 %vm61_vm2, %v314_v59 }
 0x487   :  { %719 = vmatpush3.bf16.msra.mxu1 %v806_v1  ;;  %726 = vmatprep.mubr.msk.bf16.mxu1 %vm771_vm0, %v770_v0 }
 0x488   :  { %720 = vmatprep.subr.bf16.mxu1 %v770_v0 }
 0x48b   :  { %721 = vmatpush3.bf16.msra.mxu1 %v817_v2  ;;  %v576_v2 = vld [vmem:[%s991_s1 + $0x30] sm:$0xff] }
 0x48c   :  { %722 = vmatprep.subr.bf16.mxu1 %v770_v0  ;;  %vm362_vm8 = vcmp.ne.f32.partialorder %v576_v2, 0.0 }
 0x48f   :  { %723 = vmatpush3.bf16.msra.mxu1 %v829_v4 }
 0x490   :  { %724 = vmatprep.subr.bf16.mxu1 %v770_v0 }
 0x493   :  { %725 = vmatpush3.bf16.msra.mxu1 %v838_v5  ;;  %v577_v5 = vld [vmem:[%s990_s0 + $0x38] sm:$0xff] }
 0x559   :  { %v354_v61 = vpop.f32.mrb[8].mxu1 }
 0x55a   :  { %v355_v62 = vadd.f32 %v574_v60, %v354_v61  ;;  %v704_v63 = vpop.f32.mrb[9].mxu1 }
 0x55b   :  { %v357_v1 = vpop.f32.mrb[10].mxu1 }
 0x55c   :  { %764 = vtanh.f32 %v355_v62  ;;  %v705_v3 = vpop.f32.mrb[11].mxu1 }
 0x566   :  { %v765_v4 = vpop.eup %764 }
 0x567   :  { %v364_v6 = vsel %vm362_vm8, %v765_v4, %v313_v58 }
 0x568   :  { %v365_v7 = vpack.c.bf16 %v364_v6, %v364_v6 }
 0x56a   :  { %715 = vmatmul.mubr.msk.bf16.vlgmr.msra.gmra.mrb[12].mxu0 %vm61_vm2, %v365_v7 }
 0x56b   :  { %738 = vmatprep.mubr.msk.bf16.mxu0 %vm771_vm0, %v770_v0  ;;  %731 = vmatpush3.bf16.msra.mxu0 %v748_v17 }
 0x56c   :  { %732 = vmatprep.subr.bf16.mxu0 %v770_v0 }
 0x56f   :  { %733 = vmatpush3.bf16.msra.mxu0 %v749_v18 }
 0x570   :  { %734 = vmatprep.subr.bf16.mxu0 %v770_v0 }
 0x573   :  { %735 = vmatpush3.bf16.msra.mxu0 %v750_v19 }
 0x574   :  { %736 = vmatprep.subr.bf16.mxu0 %v770_v0  ;;  %v583_v0 = vld [vmem:[%s993_s4] ss:$0 sm:$0xff] }
 0x577   :  { %737 = vmatpush3.bf16.msra.mxu0 %v751_v20 }
 0x63d   :  { %v405_v8 = vpop.f32.mrb[12].mxu0 }
 0x63e   :  { %v406_v9 = vadd.f32 %v577_v5, %v405_v8  ;;  %v716_v10 = vpop.f32.mrb[13].mxu0 }
 0x63f   :  { %v408_v11 = vpop.f32.mrb[14].mxu0 }
 0x640   :  { %766 = vtanh.f32 %v406_v9  ;;  %v717_v12 = vpop.f32.mrb[15].mxu0 }
 0x64a   :  { %v767_v14 = vpop.eup %766 }
 0x64b   :  { %v415_v15 = vsel %vm413_vm9, %v767_v14, %v364_v6 }
 0x64c   :  { %v416_v16 = vpack.c.bf16 %v415_v15, %v415_v15 }
 0x64e   :  { %727 = vmatmul.mubr.msk.bf16.vlgmr.msra.gmra.mrb[12].mxu1 %vm61_vm2, %v416_v16 }
 0x721   :  { %v456_v22 = vpop.f32.mrb[12].mxu1 }
 0x722   :  { %v457_v23 = vadd.f32 %v580_v21, %v456_v22  ;;  %v728_v24 = vpop.f32.mrb[13].mxu1 }
 0x723   :  { %v459_v25 = vpop.f32.mrb[14].mxu1 }
 0x724   :  { %768 = vtanh.f32 %v457_v23  ;;  %v729_v26 = vpop.f32.mrb[15].mxu1 }
 0x72e   :  { %v769_v28 = vpop.eup %768 }
 0x72f   :  { %v466_v29 = vsel %vm464_vm10, %v769_v28, %v415_v15 }
 0x730   :  { %v467_v30 = vpack.c.bf16 %v466_v29, %v466_v29 }
 0x732   :  { %739 = vmatmul.mubr.msk.bf16.vlgmr.msra.gmra.mrb[16].mxu0 %vm61_vm2, %v467_v30 }
 0x805   :  { %v544_v31 = vpop.f32.mrb[16].mxu0 }
 0x806   :  { %v545_v32 = vadd.f32 %v583_v0, %v544_v31  ;;  %v740_v33 = vpop.f32.mrb[17].mxu0 }
 0x807   :  { %v547_v34 = vpop.f32.mrb[18].mxu0 }
 0x808   :  { %550 = vst [vmem:[%s994_s5] sm:$0xff] %v545_v32  ;;  %v741_v35 = vpop.f32.mrb[19].mxu0 }

</bundles_post_ra>
